<compile_context>
chip_gen: v7x
topology: tpu7x:2x2x1
jax: 0.10.0
libtpu: 0.0.40
codegen_flags: <defaults>
</compile_context>

<pallas_src>
import functools

import jax
import jax.numpy as jnp
from jax.experimental import pallas as pl
from jax.experimental.pallas import tpu as pltpu


def _round_up(x, m):
    return ((x + m - 1) // m) * m


def _padded_f32_bytes(rows, cols):
    """Bytes of an f32 VMEM tile after (8, 128) sublane/lane padding."""
    return _round_up(max(int(rows), 1), 8) * _round_up(max(int(cols), 1), 128) * 4


def _fused_mlp_kernel(*refs, num_layers):
    """One column-tile (feature-major) of the whole MLP; intermediates stay in vregs/VMEM."""
    x_ref = refs[0]                               # (d_in, tm)  -- batch on lanes
    wb_refs = refs[1:1 + 2 * num_layers]
    o_ref = refs[1 + 2 * num_layers]              # (3, tm)

    h = x_ref[...].astype(jnp.float32)
    for li in range(num_layers):
        w = wb_refs[2 * li][...]                  # (d_out, d_in)  -- PyTorch layout
        b = wb_refs[2 * li + 1][...]              # (d_out, 1), broadcasts over lanes
        y = jnp.dot(w, h, preferred_element_type=jnp.float32) + b
        if li < num_layers - 1:
            h = jnp.maximum(y, 0.0)               # ReLU on the VPU, lane-dense
        else:
            h = jax.nn.sigmoid(y)                 # sigmoid epilogue on the (3, tm) slab
    o_ref[...] = h.astype(o_ref.dtype)


def fourier_network_forward(x, params, *, tm=16384, core_parallel=False):
    """Fused forward: single pallas_call, batch on the lane axis, weights VMEM-resident.

    x: (n, d_in) f32.  params: list of (W, b) with W shaped (d_out, d_in) (PyTorch layout)
    and b shaped (d_out,).  Returns (n, 3).
    Set core_parallel=True on v7x (2 TCs/chip) when the batch spans >= 2 tiles.
    """
    n, d_in = x.shape
    num_layers = len(params)
    d_out = params[-1][0].shape[0]
    hidden = max(w.shape[0] for w, _ in params)

    # Tile sizing: lane dimension, multiple of 128, as large as the batch, capped at 16 Ki
    # lanes (sweep 16K..64K on big batches).  In this layout a full tile set is ~10 MiB.
    tm = max(128, min(_round_up(int(tm), 128), 32768))
    tm = min(tm, _round_up(n, 128))
    grid = (pl.cdiv(n, tm),)                      # partial final tile is masked by Pallas

    # Transposed (feature-major) views.  Layout plumbing only; lane-dense kernel I/O.
    x_t = x.T                                     # (d_in, n)

    flat_params = []
    in_specs = [pl.BlockSpec((d_in, tm), lambda i: (0, i))]          # x^T column tile
    for (w, b) in params:
        do, di = w.shape
        flat_params.append(w)
        flat_params.append(b.reshape(do, 1))
        # Full arrays, constant index_maps: fetched once, resident across grid steps.
        in_specs.append(pl.BlockSpec((do, di), lambda i: (0, 0)))
        in_specs.append(pl.BlockSpec((do, 1), lambda i: (0, 0)))

    # Explicit scoped-VMEM budget from the actual padded, double-buffered tile sizes
    # (v5e scoped default is 16 MiB; keep the cap below v7x's 64 MiB physical VMEM).
    vmem_bytes = (2 * _padded_f32_bytes(d_in, tm)            # x tile, double-buffered
                  + 2 * _padded_f32_bytes(d_out, tm)         # out tile, double-buffered
                  + 6 * _padded_f32_bytes(hidden, tm))       # live intermediates headroom
    for (w, b) in params:
        vmem_bytes += 2 * (_padded_f32_bytes(*w.shape) + _padded_f32_bytes(w.shape[0], 1))
    vmem_limit = int(min(max(vmem_bytes + (4 << 20), 32 << 20), 48 << 20))

    dims = (pltpu.CORE_PARALLEL,) if core_parallel else ("parallel",)

    out_t = pl.pallas_call(
        functools.partial(_fused_mlp_kernel, num_layers=num_layers),
        out_shape=jax.ShapeDtypeStruct((d_out, n), x.dtype),
        grid_spec=pltpu.PrefetchScalarGridSpec(
            num_scalar_prefetch=0,
            grid=grid,
            in_specs=in_specs,
            out_specs=pl.BlockSpec((d_out, tm), lambda i: (0, i)),
        ),
        compiler_params=pltpu.CompilerParams(
            dimension_semantics=dims,
            vmem_limit_bytes=vmem_limit,
        ),
    )(x_t, *flat_params)
    return out_t.T                                 # (n, 3)


def init_fourier_network_params(key, input_dim, num_layers, num_channels):
    """Mirror nn.Linear defaults: U(-1/sqrt(fan_in), 1/sqrt(fan_in)); weights stored [out, in]."""
    dims = [input_dim] + [num_channels] * (num_layers - 1) + [3]
    params = []
    for li in range(num_layers):
        d_in, d_out = dims[li], dims[li + 1]
        key, kw, kb = jax.random.split(key, 3)
        bound = 1.0 / jnp.sqrt(jnp.float32(d_in))
        w = jax.random.uniform(kw, (d_out, d_in), jnp.float32, -bound, bound)
        b = jax.random.uniform(kb, (d_out,), jnp.float32, -bound, bound)
        params.append((w, b))
    return params


def fourier_network_forward_ref(x, params):
    """Pure-JAX reference for correctness checking (x: (n, d_in))."""
    for w, b in params[:-1]:
        x = jnp.maximum(x @ w.T + b, 0.0)
    w_last, b_last = params[-1]
    return jax.nn.sigmoid(x @ w_last.T + b_last)


if __name__ == "__main__":
    input_dim = 4        # Fourier feature dimension
    num_layers = 4
    num_channels = 32
    batch = 256

    key = jax.random.PRNGKey(0)
    key, kx, kx2 = jax.random.split(key, 3)
    params = init_fourier_network_params(key, input_dim, num_layers, num_channels)

    # Case 1: batch is a multiple of 128 -> single grid step, full tile.
    x = jax.random.normal(kx, (batch, input_dim), jnp.float32)
    out = jax.block_until_ready(fourier_network_forward(x, params))
    ref = fourier_network_forward_ref(x, params)
    assert out.shape == (batch, 3)
    assert jnp.allclose(out, ref, atol=1e-5, rtol=1e-5)

    # Case 2: ragged batch -> exercises the Pallas-masked partial final tile.
    x2 = jax.random.normal(kx2, (200, input_dim), jnp.float32)
    out2 = jax.block_until_ready(fourier_network_forward(x2, params))
    ref2 = fourier_network_forward_ref(x2, params)
    assert out2.shape == (200, 3)
    assert jnp.allclose(out2, ref2, atol=1e-5, rtol=1e-5)

    print("KERNEL_OK")
</pallas_src>

<mosaic_0001>
module attributes {stable_mosaic.version = 11 : i64} {
  func.func @_fused_mlp_kernel(%arg0: i32, %arg1: memref<4x256xf32, #tpu.memory_space<vmem>>, %arg2: memref<32x4xf32, #tpu.memory_space<vmem>>, %arg3: memref<32x1xf32, #tpu.memory_space<vmem>>, %arg4: memref<32x32xf32, #tpu.memory_space<vmem>>, %arg5: memref<32x1xf32, #tpu.memory_space<vmem>>, %arg6: memref<32x32xf32, #tpu.memory_space<vmem>>, %arg7: memref<32x1xf32, #tpu.memory_space<vmem>>, %arg8: memref<3x32xf32, #tpu.memory_space<vmem>>, %arg9: memref<3x1xf32, #tpu.memory_space<vmem>>, %arg10: memref<3x256xf32, #tpu.memory_space<vmem>>) attributes {dimension_semantics = [#tpu.dimension_semantics<parallel>], iteration_bounds = array<i64: 1>, scalar_prefetch = 0 : i64, scratch_operands = 0 : i64, tpu.core_type = #tpu.core_type<tc>, window_params = [{transform_indices = @transform_0, window_bounds = array<i64: 4, 256>}, {pipeline_mode = #tpu.pipeline_mode<synchronous>, transform_indices = @transform_1, window_bounds = array<i64: 32, 4>}, {pipeline_mode = #tpu.pipeline_mode<synchronous>, transform_indices = @transform_2, window_bounds = array<i64: 32, 1>}, {pipeline_mode = #tpu.pipeline_mode<synchronous>, transform_indices = @transform_3, window_bounds = array<i64: 32, 32>}, {pipeline_mode = #tpu.pipeline_mode<synchronous>, transform_indices = @transform_4, window_bounds = array<i64: 32, 1>}, {pipeline_mode = #tpu.pipeline_mode<synchronous>, transform_indices = @transform_5, window_bounds = array<i64: 32, 32>}, {pipeline_mode = #tpu.pipeline_mode<synchronous>, transform_indices = @transform_6, window_bounds = array<i64: 32, 1>}, {pipeline_mode = #tpu.pipeline_mode<synchronous>, transform_indices = @transform_7, window_bounds = array<i64: 3, 32>}, {pipeline_mode = #tpu.pipeline_mode<synchronous>, transform_indices = @transform_8, window_bounds = array<i64: 3, 1>}, {transform_indices = @transform_9, window_bounds = array<i64: 3, 256>}]} {
    %c0 = arith.constant 0 : index
    %c0_0 = arith.constant 0 : index
    %0 = vector.load %arg1[%c0, %c0_0] : memref<4x256xf32, #tpu.memory_space<vmem>>, vector<4x256xf32>
    %c0_1 = arith.constant 0 : index
    %c0_2 = arith.constant 0 : index
    %1 = vector.load %arg2[%c0_1, %c0_2] : memref<32x4xf32, #tpu.memory_space<vmem>>, vector<32x4xf32>
    %c0_3 = arith.constant 0 : index
    %c0_4 = arith.constant 0 : index
    %2 = vector.load %arg3[%c0_3, %c0_4] : memref<32x1xf32, #tpu.memory_space<vmem>>, vector<32x1xf32>
    %cst = arith.constant dense<0.000000e+00> : vector<32x256xf32>
    %3 = tpu.matmul %1, %0, %cst {dimension_numbers = #tpu.dot_dimension_numbers<[1], [0], [0], [1], [0, 0, 1, 1], [], []>} : vector<32x4xf32>, vector<4x256xf32>, vector<32x256xf32> -> vector<32x256xf32>
    %4 = vector.broadcast %2 : vector<32x1xf32> to vector<32x256xf32>
    %5 = arith.addf %3, %4 : vector<32x256xf32>
    %cst_5 = arith.constant 0.000000e+00 : f32
    %6 = vector.broadcast %cst_5 : f32 to vector<32x256xf32>
    %7 = arith.maximumf %5, %6 : vector<32x256xf32>
    %c0_6 = arith.constant 0 : index
    %c0_7 = arith.constant 0 : index
    %8 = vector.load %arg4[%c0_6, %c0_7] : memref<32x32xf32, #tpu.memory_space<vmem>>, vector<32x32xf32>
    %c0_8 = arith.constant 0 : index
    %c0_9 = arith.constant 0 : index
    %9 = vector.load %arg5[%c0_8, %c0_9] : memref<32x1xf32, #tpu.memory_space<vmem>>, vector<32x1xf32>
    %cst_10 = arith.constant dense<0.000000e+00> : vector<32x256xf32>
    %10 = tpu.matmul %8, %7, %cst_10 {dimension_numbers = #tpu.dot_dimension_numbers<[1], [0], [0], [1], [0, 0, 1, 1], [], []>} : vector<32x32xf32>, vector<32x256xf32>, vector<32x256xf32> -> vector<32x256xf32>
    %11 = vector.broadcast %9 : vector<32x1xf32> to vector<32x256xf32>
    %12 = arith.addf %10, %11 : vector<32x256xf32>
    %cst_11 = arith.constant 0.000000e+00 : f32
    %13 = vector.broadcast %cst_11 : f32 to vector<32x256xf32>
    %14 = arith.maximumf %12, %13 : vector<32x256xf32>
    %c0_12 = arith.constant 0 : index
    %c0_13 = arith.constant 0 : index
    %15 = vector.load %arg6[%c0_12, %c0_13] : memref<32x32xf32, #tpu.memory_space<vmem>>, vector<32x32xf32>
    %c0_14 = arith.constant 0 : index
    %c0_15 = arith.constant 0 : index
    %16 = vector.load %arg7[%c0_14, %c0_15] : memref<32x1xf32, #tpu.memory_space<vmem>>, vector<32x1xf32>
    %cst_16 = arith.constant dense<0.000000e+00> : vector<32x256xf32>
    %17 = tpu.matmul %15, %14, %cst_16 {dimension_numbers = #tpu.dot_dimension_numbers<[1], [0], [0], [1], [0, 0, 1, 1], [], []>} : vector<32x32xf32>, vector<32x256xf32>, vector<32x256xf32> -> vector<32x256xf32>
    %18 = vector.broadcast %16 : vector<32x1xf32> to vector<32x256xf32>
    %19 = arith.addf %17, %18 : vector<32x256xf32>
    %cst_17 = arith.constant 0.000000e+00 : f32
    %20 = vector.broadcast %cst_17 : f32 to vector<32x256xf32>
    %21 = arith.maximumf %19, %20 : vector<32x256xf32>
    %c0_18 = arith.constant 0 : index
    %c0_19 = arith.constant 0 : index
    %22 = vector.load %arg8[%c0_18, %c0_19] : memref<3x32xf32, #tpu.memory_space<vmem>>, vector<3x32xf32>
    %c0_20 = arith.constant 0 : index
    %c0_21 = arith.constant 0 : index
    %23 = vector.load %arg9[%c0_20, %c0_21] : memref<3x1xf32, #tpu.memory_space<vmem>>, vector<3x1xf32>
    %cst_22 = arith.constant dense<0.000000e+00> : vector<3x256xf32>
    %24 = tpu.matmul %22, %21, %cst_22 {dimension_numbers = #tpu.dot_dimension_numbers<[1], [0], [0], [1], [0, 0, 1, 1], [], []>} : vector<3x32xf32>, vector<32x256xf32>, vector<3x256xf32> -> vector<3x256xf32>
    %25 = vector.broadcast %23 : vector<3x1xf32> to vector<3x256xf32>
    %26 = arith.addf %24, %25 : vector<3x256xf32>
    %27 = arith.negf %26 : vector<3x256xf32>
    %28 = math.exp %27 : vector<3x256xf32>
    %cst_23 = arith.constant 1.000000e+00 : f32
    %29 = vector.broadcast %cst_23 : f32 to vector<3x256xf32>
    %30 = arith.addf %29, %28 : vector<3x256xf32>
    %31 = arith.divf %29, %30 : vector<3x256xf32>
    %c0_24 = arith.constant 0 : index
    %c0_25 = arith.constant 0 : index
    %32 = vector.load %arg10[%c0_24, %c0_25] : memref<3x256xf32, #tpu.memory_space<vmem>>, vector<3x256xf32>
    tpu.vector_store %arg10[%c0_24, %c0_25], %31 {strides = array<i32>} : memref<3x256xf32, #tpu.memory_space<vmem>>, vector<3x256xf32>,
    return
  }
  func.func @transform_0(%arg0: i32) -> (i32, i32) {
    %c0_i32 = arith.constant 0 : i32
    %c0_i32_0 = arith.constant 0 : i32
    return %c0_i32, %arg0 : i32, i32
  }
  func.func @transform_1(%arg0: i32) -> (i32, i32) {
    %c0_i32 = arith.constant 0 : i32
    %c0_i32_0 = arith.constant 0 : i32
    %c0_i32_1 = arith.constant 0 : i32
    return %c0_i32, %c0_i32_0 : i32, i32
  }
  func.func @transform_2(%arg0: i32) -> (i32, i32) {
    %c0_i32 = arith.constant 0 : i32
    %c0_i32_0 = arith.constant 0 : i32
    %c0_i32_1 = arith.constant 0 : i32
    return %c0_i32, %c0_i32_0 : i32, i32
  }
  func.func @transform_3(%arg0: i32) -> (i32, i32) {
    %c0_i32 = arith.constant 0 : i32
    %c0_i32_0 = arith.constant 0 : i32
    %c0_i32_1 = arith.constant 0 : i32
    return %c0_i32, %c0_i32_0 : i32, i32
  }
  func.func @transform_4(%arg0: i32) -> (i32, i32) {
    %c0_i32 = arith.constant 0 : i32
    %c0_i32_0 = arith.constant 0 : i32
    %c0_i32_1 = arith.constant 0 : i32
    return %c0_i32, %c0_i32_0 : i32, i32
  }
  func.func @transform_5(%arg0: i32) -> (i32, i32) {
    %c0_i32 = arith.constant 0 : i32
    %c0_i32_0 = arith.constant 0 : i32
    %c0_i32_1 = arith.constant 0 : i32
    return %c0_i32, %c0_i32_0 : i32, i32
  }
  func.func @transform_6(%arg0: i32) -> (i32, i32) {
    %c0_i32 = arith.constant 0 : i32
    %c0_i32_0 = arith.constant 0 : i32
    %c0_i32_1 = arith.constant 0 : i32
    return %c0_i32, %c0_i32_0 : i32, i32
  }
  func.func @transform_7(%arg0: i32) -> (i32, i32) {
    %c0_i32 = arith.constant 0 : i32
    %c0_i32_0 = arith.constant 0 : i32
    %c0_i32_1 = arith.constant 0 : i32
    return %c0_i32, %c0_i32_0 : i32, i32
  }
  func.func @transform_8(%arg0: i32) -> (i32, i32) {
    %c0_i32 = arith.constant 0 : i32
    %c0_i32_0 = arith.constant 0 : i32
    %c0_i32_1 = arith.constant 0 : i32
    return %c0_i32, %c0_i32_0 : i32, i32
  }
  func.func @transform_9(%arg0: i32) -> (i32, i32) {
    %c0_i32 = arith.constant 0 : i32
    %c0_i32_0 = arith.constant 0 : i32
    return %c0_i32, %arg0 : i32, i32
  }
}

</mosaic_0001>

<bundles_post_ra>
// kernel: tpu_custom_call.1
= control target key start
LH: loop header
LB: loop body
LE: loop exit
PB: predicated region body
PF: predicated region fallthrough
CT: control target
= control target key end

     0   :  { %vm77_vm0 = vcmask 1043456   ;;  %v647_v2 = vmov 0.0   ;;  %vm64_vm1 = vcmask 31744   ;;  %v648_v5 = vmov 0   ;;  %s819_s0 = inlined_call_operand.vmem [shape: f32[4,256], index: 0, kind: input, shape index: {}]   ;;  %s820_s1 = inlined_call_operand.vmem [shape: f32[32,4], index: 1, kind: input, shape index: {}]   ;;  %s821_s2 = inlined_call_operand.vmem [shape: f32[32,1], index: 2, kind: input, shape index: {}]   ;;  %s822_s3 = inlined_call_operand.vmem [shape: f32[32,32], index: 3, kind: input, shape index: {}]   ;;  %s823_s4 = inlined_call_operand.vmem [shape: f32[32,1], index: 4, kind: input, shape index: {}]   ;;  %s824_s5 = inlined_call_operand.vmem [shape: f32[32,32], index: 5, kind: input, shape index: {}]   ;;  %s825_s6 = inlined_call_operand.vmem [shape: f32[32,1], index: 6, kind: input, shape index: {}]   ;;  %s826_s7 = inlined_call_operand.vmem [shape: f32[3,32], index: 7, kind: input, shape index: {}]   ;;  %s827_s8 = inlined_call_operand.vmem [shape: f32[3,1], index: 8, kind: input, shape index: {}]   ;;  %s828_s9 = inlined_call_operand.hbm [shape: f32[3,256], index: 9, kind: output, shape index: {}]  }
   0x1   :  { %v33_v0 = vld [vmem:[%s819_s0] sm:$0xff]  ;;  %146 = vmatprep.mubr.f32.mxu0 %v647_v2  ;;  %158 = vmatprep.mubr.f32.mxu1 %v647_v2  ;;  %v36_v4 = vld [vmem:[%s820_s1 + $0x10] sm:$0xff]  ;;  %v35_v8 = vld [vmem:[%s820_s1 + $0x8] sm:$0xff] }
   0x2   :  { %v63_v1 = vcombine.high %v33_v0, %v33_v0  ;;  %v34_v3 = vld [vmem:[%s820_s1] sm:$0xff]  ;;  %612 = vset.pattern.permute.xlu0 %v648_v5  ;;  %613 = vset.pattern.permute.xlu1 %v648_v5  ;;  %v40_v7 = vld [vmem:[%s821_s2 + $0x10] sm:$0xff]  ;;  %v37_v9 = vld [vmem:[%s820_s1 + $0x18] sm:$0xff] }
   0x3   :  { %v38_v6 = vld [vmem:[%s821_s2] sm:$0xff] }
   0x4   :  { %566 = vmatprep.subr.msk.mxu0 %vm77_vm0, %v63_v1  ;;  %607 = vmatprep.subr.msk.mxu1 %vm77_vm0, %v63_v1 }
   0x5   :  { %567 = vmatpush1.msk.msra.mxu0 %vm77_vm0, %v33_v0  ;;  %608 = vmatpush1.msk.msra.mxu1 %vm77_vm0, %v33_v0 }
   0x6   :  { %568 = vmatmul.mubr.msk.f32.vlgmr.msra.gmra.mrb[0].mxu0 %vm64_vm1, %v34_v3  ;;  %570 = vmatmul.mubr.msk.f32.vlgmr.msra.gmra.mrb[0].mxu1 %vm64_vm1, %v36_v4 }
   0x7   :  { %152 = vmatprep.mubr.f32.mxu0 %v647_v2  ;;  %164 = vmatprep.mubr.f32.mxu1 %v647_v2 }
   0x8   :  { %14 = vsyncpa [#allocation3], 0  ;;  %44 = vperm.xlu0 %612, %v38_v6   ;;  %54 = vperm.xlu1 %613, %v40_v7   ;;  %v39_v10 = vld [vmem:[%s821_s2 + $0x8] sm:$0xff]  ;;  %v41_v11 = vld [vmem:[%s821_s2 + $0x18] sm:$0xff]  ;;  %vm207_vm2 = vcmask 261120   ;;  %s649_s10 = smov [#allocation2]  }
   0x9   :  { %v183_v12 = vld [vmem:[%s823_s4] sm:$0xff]  ;;  %v184_v13 = vld [vmem:[%s823_s4 + $0x8] sm:$0xff]  ;;  %v185_v14 = vld [vmem:[%s823_s4 + $0x10] sm:$0xff]  ;;  %s558_s11 = sshll.u32 %s649_s10, 4  ;;  %s559_s11 = int_to_ptr.vmem [resolvable:$true] %s558_s11 }
   0xa   :  { %569 = vmatmul.mubr.msk.f32.gmra.mrb[2].mxu0 %vm64_vm1, %v35_v8  ;;  %571 = vmatmul.mubr.msk.f32.gmra.mrb[2].mxu1 %vm64_vm1, %v37_v9  ;;  %v186_v15 = vld [vmem:[%s823_s4 + $0x18] sm:$0xff]  ;;  %v321_v16 = vld [vmem:[%s825_s6] sm:$0xff]  ;;  %v322_v17 = vld [vmem:[%s825_s6 + $0x8] sm:$0xff]  ;;  %p628_p1 = scmp.lt.s32.totalorder %s559_s11, %s559_s11 }
   0xb   :  { %284 = vmatprep.mubr.f32.mxu1 %v647_v2  ;;  %421 = vmatprep.mubr.f32.mxu0 %v647_v2  ;;  %v323_v18 = vld [vmem:[%s825_s6 + $0x10] sm:$0xff]  ;;  %v324_v19 = vld [vmem:[%s825_s6 + $0x18] sm:$0xff]  ;;  %v455_v20 = vld [vmem:[%s827_s8] sm:$0x7] }
   0xc   :  { %49 = vperm.xlu0 %612, %v39_v10   ;;  %59 = vperm.xlu1 %613, %v41_v11   ;;  %v179_v53 = vld [vmem:[%s822_s3] sm:$0xff]  ;;  %v180_v54 = vld [vmem:[%s822_s3 + $0x8] sm:$0xff]  ;;  %v181_v55 = vld [vmem:[%s822_s3 + $0x10] sm:$0xff] }
   0xd   :  { %v182_v56 = vld [vmem:[%s822_s3 + $0x18] sm:$0xff] }
  0x10   :  { %189 = vperm.xlu0 %612, %v183_v12   ;;  %194 = vperm.xlu1 %613, %v184_v13  }
  0x14   :  { %199 = vperm.xlu0 %612, %v185_v14   ;;  %204 = vperm.xlu1 %613, %v186_v15  }
  0x18   :  { %327 = vperm.xlu0 %612, %v321_v16   ;;  %332 = vperm.xlu1 %613, %v322_v17  }
  0x1c   :  { %337 = vperm.xlu0 %612, %v323_v18   ;;  %342 = vperm.xlu1 %613, %v324_v19  }
  0x20   :  { %458 = vperm.xlu0 %612, %v455_v20  }
  0x87   :  { %v45_v21 = vpop.permute.xlu0 %44  ;;  %v55_v22 = vpop.permute.xlu1 %54 }
  0x8b   :  { %v50_v29 = vpop.permute.xlu0 %49  ;;  %v60_v30 = vpop.permute.xlu1 %59 }
  0x8f   :  { %v190_v59 = vpop.permute.xlu0 %189  ;;  %v195_v61 = vpop.permute.xlu1 %194 }
  0x93   :  { %v200_v11 = vpop.permute.xlu0 %199  ;;  %v205_v14 = vpop.permute.xlu1 %204 }
  0xd9   :  { %v148_v23 = vpop.f32.mrb[0].mxu0  ;;  %v160_v24 = vpop.f32.mrb[0].mxu1 }
  0xda   :  { %v150_v25 = vpop.f32.mrb[1].mxu0  ;;  %v161_v26 = vadd.f32 %v160_v24, %v55_v22  ;;  %v162_v27 = vpop.f32.mrb[1].mxu1  ;;  %v149_v31 = vadd.f32 %v148_v23, %v45_v21 }
  0xdb   :  { %v163_v28 = vadd.f32 %v162_v27, %v55_v22  ;;  %v151_v32 = vadd.f32 %v150_v25, %v45_v21  ;;  %v318_v27 = vld [vmem:[%s824_s5 + $0x8] sm:$0xff] }
  0xdc   :  { %v175_v35 = vmax.f32 %v161_v26, 0.0  ;;  %v171_v43 = vmax.f32 %v149_v31, 0.0  ;;  %v317_v26 = vld [vmem:[%s824_s5] sm:$0xff] }
  0xdd   :  { %v154_v33 = vpop.f32.mrb[2].mxu0  ;;  %v166_v34 = vpop.f32.mrb[2].mxu1  ;;  %v176_v40 = vmax.f32 %v163_v28, 0.0  ;;  %v172_v46 = vmax.f32 %v151_v32, 0.0  ;;  %v319_v28 = vld [vmem:[%s824_s5 + $0x10] sm:$0xff] }
  0xde   :  { %v155_v36 = vadd.f32 %v154_v33, %v50_v29  ;;  %v167_v37 = vadd.f32 %v166_v34, %v60_v30  ;;  %v156_v38 = vpop.f32.mrb[3].mxu0  ;;  %v168_v39 = vpop.f32.mrb[3].mxu1 }
  0xdf   :  { %v157_v41 = vadd.f32 %v156_v38, %v50_v29  ;;  %v169_v42 = vadd.f32 %v168_v39, %v60_v30  ;;  %v320_v29 = vld [vmem:[%s824_s5 + $0x18] sm:$0xff]  ;;  %v328_v32 = vpop.permute.xlu0 %327  ;;  %v333_v34 = vpop.permute.xlu1 %332 }
  0xe0   :  { %v173_v44 = vmax.f32 %v155_v36, 0.0  ;;  %v177_v45 = vmax.f32 %v167_v37, 0.0 }
  0xe1   :  { %v174_v47 = vmax.f32 %v157_v41, 0.0  ;;  %v178_v48 = vmax.f32 %v169_v42, 0.0 }
  0xe2   :  { %v585_v49 = vpack.c.bf16 %v173_v44, %v171_v43  ;;  %v589_v50 = vpack.c.bf16 %v177_v45, %v175_v35 }
  0xe3   :  { %v583_v51 = vpack.c.bf16 %v174_v47, %v172_v46  ;;  %v587_v52 = vpack.c.bf16 %v178_v48, %v176_v40  ;;  %v338_v46 = vpop.permute.xlu0 %337 }
  0xe5   :  { %584 = vmatprep.subr.bf16.mxu1 %v583_v51 }
  0xe6   :  { %586 = vmatpush1.bf16.msra.mxu1 %v585_v49  ;;  %v343_v49 = vpop.permute.xlu1 %342 }
  0xe7   :  { %588 = vmatprep.subr.bf16.mxu1 %v587_v52 }
  0xea   :  { %590 = vmatpush1.bf16.msra.mxu1 %v589_v50 }
  0xed   :  { %572 = vmatmul.mubr.msk.f32.vlgmr.msra.gmra.mrb[4].mxu1 %vm207_vm2, %v179_v53 }
  0xee   :  { %290 = vmatprep.mubr.f32.mxu1 %v647_v2 }
  0xf1   :  { %573 = vmatmul.mubr.msk.f32.gmra.mrb[6].mxu1 %vm207_vm2, %v180_v54 }
  0xf2   :  { %296 = vmatprep.mubr.f32.mxu1 %v647_v2 }
  0xf5   :  { %574 = vmatmul.mubr.msk.f32.gmra.mrb[8].mxu1 %vm207_vm2, %v181_v55 }
  0xf6   :  { %302 = vmatprep.mubr.f32.mxu1 %v647_v2 }
  0xf9   :  { %575 = vmatmul.mubr.msk.f32.gmra.mrb[10].mxu1 %vm207_vm2, %v182_v56 }
  0xfa   :  { %528 = vmatprep.mubr.f32.mxu1 %v647_v2 }
 0x1c0   :  { %v286_v57 = vpop.f32.mrb[4].mxu1 }
 0x1c1   :  { %v288_v58 = vpop.f32.mrb[5].mxu1  ;;  %v287_v60 = vadd.f32 %v286_v57, %v190_v59 }
 0x1c2   :  { %v289_v62 = vadd.f32 %v288_v58, %v190_v59 }
 0x1c3   :  { %v309_v4 = vmax.f32 %v287_v60, 0.0 }
 0x1c4   :  { %v292_v63 = vpop.f32.mrb[6].mxu1  ;;  %v310_v6 = vmax.f32 %v289_v62, 0.0  ;;  %v459_v62 = vpop.permute.xlu0 %458 }
 0x1c5   :  { %v293_v0 = vadd.f32 %v292_v63, %v195_v61  ;;  %v294_v1 = vpop.f32.mrb[7].mxu1 }
 0x1c6   :  { %v295_v3 = vadd.f32 %v294_v1, %v195_v61  ;;  %v454_v61 = vld [vmem:[%s826_s7] sm:$0x7]  ;;  %s623_s7 = scalar_lea.vmem %s559_s11, 128 }
 0x1c7   :  { %v311_v5 = vmax.f32 %v293_v0, 0.0  ;;  %p624_p0 = scmp.ne.s32.totalorder %s559_s11, %s623_s7  ;;  %p629_p2 = scmp.lt.s32.totalorder %s623_s7, %s623_s7 }
 0x1c8   :  { %v312_v7 = vmax.f32 %v295_v3, 0.0  ;;  %v298_v8 = vpop.f32.mrb[8].mxu1 }
 0x1c9   :  { %v593_v9 = vpack.c.bf16 %v311_v5, %v309_v4  ;;  %v300_v10 = vpop.f32.mrb[9].mxu1  ;;  %v299_v13 = vadd.f32 %v298_v8, %v200_v11  ;;  %p630_p3 = por %p629_p2, %p628_p1 }
 0x1ca   :  { %v591_v12 = vpack.c.bf16 %v312_v7, %v310_v6  ;;  %v301_v15 = vadd.f32 %v300_v10, %v200_v11 }
 0x1cb   :  { %v313_v20 = vmax.f32 %v299_v13, 0.0  ;;  %p631_p4 = pnand %p630_p3, %p624_p0 }
 0x1cc   :  { %v304_v16 = vpop.f32.mrb[10].mxu1  ;;  %592 = vmatprep.subr.bf16.mxu0 %v591_v12  ;;  %v314_v22 = vmax.f32 %v301_v15, 0.0 }
 0x1cd   :  { %v305_v17 = vadd.f32 %v304_v16, %v205_v14  ;;  %v306_v18 = vpop.f32.mrb[11].mxu1  ;;  %594 = vmatpush1.bf16.msra.mxu0 %v593_v9 }
 0x1ce   :  { %v307_v19 = vadd.f32 %v306_v18, %v205_v14 }
 0x1cf   :  { %v315_v21 = vmax.f32 %v305_v17, 0.0 }
 0x1d0   :  { %v316_v23 = vmax.f32 %v307_v19, 0.0 }
 0x1d1   :  { %v597_v24 = vpack.c.bf16 %v315_v21, %v313_v20 }
 0x1d2   :  { %v595_v25 = vpack.c.bf16 %v316_v23, %v314_v22 }
 0x1d4   :  { %596 = vmatprep.subr.bf16.mxu0 %v595_v25 }
 0x1d5   :  { %598 = vmatpush1.bf16.msra.mxu0 %v597_v24 }
 0x1d8   :  { %576 = vmatmul.mubr.msk.f32.vlgmr.msra.gmra.mrb[4].mxu0 %vm207_vm2, %v317_v26 }
 0x1d9   :  { %427 = vmatprep.mubr.f32.mxu0 %v647_v2 }
 0x1dc   :  { %577 = vmatmul.mubr.msk.f32.gmra.mrb[6].mxu0 %vm207_vm2, %v318_v27 }
 0x1dd   :  { %433 = vmatprep.mubr.f32.mxu0 %v647_v2 }
 0x1e0   :  { %578 = vmatmul.mubr.msk.f32.gmra.mrb[8].mxu0 %vm207_vm2, %v319_v28 }
 0x1e1   :  { %439 = vmatprep.mubr.f32.mxu0 %v647_v2 }
 0x1e4   :  { %579 = vmatmul.mubr.msk.f32.gmra.mrb[10].mxu0 %vm207_vm2, %v320_v29 }
 0x2ab   :  { %v423_v30 = vpop.f32.mrb[4].mxu0 }
 0x2ac   :  { %v425_v31 = vpop.f32.mrb[5].mxu0  ;;  %v424_v33 = vadd.f32 %v423_v30, %v328_v32 }
 0x2ad   :  { %v426_v35 = vadd.f32 %v425_v31, %v328_v32 }
 0x2ae   :  { %v446_v40 = vmax.f32 %v424_v33, 0.0 }
 0x2af   :  { %v429_v36 = vpop.f32.mrb[6].mxu0  ;;  %v447_v42 = vmax.f32 %v426_v35, 0.0 }
 0x2b0   :  { %v430_v37 = vadd.f32 %v429_v36, %v333_v34  ;;  %v431_v38 = vpop.f32.mrb[7].mxu0 }
 0x2b1   :  { %v432_v39 = vadd.f32 %v431_v38, %v333_v34 }
 0x2b2   :  { %v448_v41 = vmax.f32 %v430_v37, 0.0 }
 0x2b3   :  { %v449_v2 = vmax.f32 %v432_v39, 0.0  ;;  %v435_v43 = vpop.f32.mrb[8].mxu0 }
 0x2b4   :  { %v601_v44 = vpack.c.bf16 %v448_v41, %v446_v40  ;;  %v437_v45 = vpop.f32.mrb[9].mxu0  ;;  %v436_v48 = vadd.f32 %v435_v43, %v338_v46 }
 0x2b5   :  { %v599_v47 = vpack.c.bf16 %v449_v2, %v447_v42  ;;  %v438_v50 = vadd.f32 %v437_v45, %v338_v46 }
 0x2b6   :  { %v450_v55 = vmax.f32 %v436_v48, 0.0 }
 0x2b7   :  { %v441_v51 = vpop.f32.mrb[10].mxu0  ;;  %600 = vmatprep.subr.bf16.mxu1 %v599_v47  ;;  %v451_v57 = vmax.f32 %v438_v50, 0.0 }
 0x2b8   :  { %v442_v52 = vadd.f32 %v441_v51, %v343_v49  ;;  %v443_v53 = vpop.f32.mrb[11].mxu0  ;;  %602 = vmatpush1.bf16.msra.mxu1 %v601_v44 }
 0x2b9   :  { %v444_v54 = vadd.f32 %v443_v53, %v343_v49 }
 0x2ba   :  { %v452_v56 = vmax.f32 %v442_v52, 0.0 }
 0x2bb   :  { %v453_v58 = vmax.f32 %v444_v54, 0.0 }
 0x2bc   :  { %v605_v59 = vpack.c.bf16 %v452_v56, %v450_v55 }
 0x2bd   :  { %v603_v60 = vpack.c.bf16 %v453_v58, %v451_v57 }
 0x2bf   :  { %604 = vmatprep.subr.bf16.mxu1 %v603_v60 }
 0x2c0   :  { %606 = vmatpush1.bf16.msra.mxu1 %v605_v59 }
 0x2c3   :  { %580 = vmatmul.mubr.msk.f32.vlgmr.msra.gmra.mrb[12].mxu1 %vm207_vm2, %v454_v61 }
 0x396   :  { %v530_v63 = vpop.f32.mrb[12].mxu1 }
 0x397   :  { %v531_v0 = vadd.f32 %v530_v63, %v459_v62  ;;  %v532_v1 = vpop.f32.mrb[13].mxu1 }
 0x398   :  { %v533_v3 = vadd.f32 %v532_v1, %v459_v62 }
 0x399   :  { %v581_v4 = vmul.f32 -1.442695, %v531_v0 }
 0x39a   :  { %v582_v5 = vmul.f32 -1.442695, %v533_v3 }
 0x39b   :  { %615 = vpow2.f32 %v581_v4 }
 0x39c   :  { %617 = vpow2.f32 %v582_v5 }
 0x3a5   :  { %v616_v6 = vpop.eup %615 }
 0x3a6   :  { %v618_v7 = vpop.eup %617  ;;  %v541_v8 = vadd.f32 1.0, %v616_v6 }
 0x3a7   :  { %v542_v9 = vadd.f32 1.0, %v618_v7 }
 0x3a8   :  { %619 = vrcp.f32 %v541_v8 }
 0x3a9   :  { %621 = vrcp.f32 %v542_v9 }
 0x3b2   :  { %v620_v10 = vpop.eup %619 }
 0x3b3   :  { %v622_v11 = vpop.eup %621 }
 0x3b4   :  { %v549_v12 = vcombine.low %v620_v10, %v622_v11 }
 0x3b6   :  { %551 = vst [vmem:[#allocation2] sm:$0x77] %v549_v12 }
 0x3b7   :  { %634 = shalt.err (!%p631_p4)
}
 0x3b8   :  { %s635_s14 = scalar_lea.hbm %s828_s9, 128 }
 0x3b9   :  { %p636_p5 = scmp.ne.s32.totalorder %s828_s9, %s635_s14  ;;  %p639_p6 = scmp.lt.u32.totalorder %s635_s14, %s828_s9 }
 0x3bb   :  { %p641_p7 = pnand %p639_p6, %p636_p5 }
 0x3bd   :  { %644 = shalt.err (!%p641_p7)
}
 0x3be   :  { %561 = dma.vmem_to_hbm [thread:$0]  %s559_s11, 128, %s828_s9, [#allocation3]  }
 0x3bf   :  { %645 = dma.done.wait [#allocation3], 128  }
 0x3c0   :  { %646 = vsyncadd [#allocation3], 4294967168 }
 0x3c1   :  { %565 = vsyncpa [#allocation3], 1 }

</bundles_post_ra>
